<compile_context>
chip_gen: v5e
topology: v5e:2x2
jax: 0.10.0
libtpu: 0.0.40
codegen_flags: <defaults>
</compile_context>

<pallas_src>
import jax
import jax.numpy as jnp
from jax.experimental import pallas as pl
from jax.experimental.pallas import tpu as pltpu


def _attention_kernel(hidden_ref, lstm_ref, w_attn_ref, b_attn_ref, w_ctx_ref,
                      ws_ref, aw_ref):
    B, S, H = lstm_ref.shape          # H  = true hidden dim (unpadded)
    HP = w_attn_ref.shape[-1]         # HP = lane-padded output dim (mult. of 128)

    # ---- attn(lstm_outputs): one flattened 2-D MXU matmul -----------------
    if S % 8 == 0:
        # (B,S,H) -> (B*S,H): minor dim unchanged and S is a whole number of
        # sublane groups, so the reshape is layout-free (no relayout copy).
        lstm2 = lstm_ref[...].reshape(B * S, H)
        z2 = jnp.tanh(
            jnp.dot(lstm2, w_attn_ref[...],                  # (B*S, HP) on MXU
                    preferred_element_type=jnp.float32)
            + b_attn_ref[...]                                # (1, HP) bcast
        )
        z3 = z2.reshape(B, S, HP)                            # minor dim unchanged
    else:
        # Guarded fallback: keep the batched form rather than pay a VMEM
        # relayout from a tile-boundary-crossing reshape.
        z3 = jnp.tanh(
            jax.lax.dot_general(
                lstm_ref[...], w_attn_ref[...],
                dimension_numbers=(((2,), (0,)), ((), ())),
                preferred_element_type=jnp.float32)
            + b_attn_ref[...][None])

    # ---- context score + softmax over the sequence axis -------------------
    # Padded columns are tanh(0 + 0) = 0 and w_ctx padding is 0 -> exact.
    scores = jnp.sum(z3 * w_ctx_ref[...][None, :, :], axis=-1)       # (B, S)
    m = jnp.max(scores, axis=1, keepdims=True)
    e = jnp.exp(scores - m)
    denom = jnp.sum(e, axis=1, keepdims=True)
    attn_weights = e * pl.reciprocal(denom, approx=False)            # (B, S)

    # ---- weighted sum over S: VPU multiply + sublane (XLU) reduce ---------
    # hidden is unpadded (B, S, H); XLU slot is idle, and this avoids an
    # M=1 batched MXU matmul that wastes nearly the whole systolic array.
    ws = jnp.sum(hidden_ref[...] * attn_weights[:, :, None], axis=1)  # (B, H)

    ws_ref[...] = ws.astype(ws_ref.dtype)          # (B, H) direct (masked vst)
    aw_ref[...] = attn_weights.astype(aw_ref.dtype)


def prepare_attention_params(w_attn, b_attn, w_ctx):
    """One-time parameter preprocessing (nn.Linear transpose + lane padding).

    Call once at init time; the padded/transposed tensors are what the
    per-step forward consumes, so no pad/transpose HLOs are emitted per call.
    """
    out_dim, in_dim = w_attn.shape                 # nn.Linear weight: [out, in]
    HP = ((out_dim + 127) // 128) * 128
    w_attn_tp = jnp.pad(jnp.transpose(w_attn), ((0, 0), (0, HP - out_dim)))
    b_attn_p = jnp.pad(b_attn.reshape(1, out_dim), ((0, 0), (0, HP - out_dim)))
    w_ctx_p = jnp.pad(w_ctx.reshape(1, out_dim), ((0, 0), (0, HP - out_dim)))
    return w_attn_tp, b_attn_p, w_ctx_p


def attention_forward(hidden, lstm_outputs, w_attn_tp, b_attn_p, w_ctx_p):
    B, S, H = hidden.shape
    HP = w_attn_tp.shape[-1]

    fsz = 4  # f32 bytes
    cost = pl.CostEstimate(
        flops=2 * B * S * H * HP + 6 * B * S * HP + 6 * B * S * H,
        transcendentals=B * S * HP + B * S,          # tanh + exp
        bytes_accessed=fsz * (2 * B * S * H + H * HP + 2 * HP + B * H + B * S),
    )

    vmem = pl.BlockSpec(memory_space=pltpu.MemorySpace.VMEM)
    ws, aw = pl.pallas_call(
        _attention_kernel,
        out_shape=(
            jax.ShapeDtypeStruct((B, H), jnp.float32),   # weighted_sum
            jax.ShapeDtypeStruct((B, S), jnp.float32),   # attn_weights
        ),
        in_specs=[vmem] * 5,
        out_specs=(vmem, vmem),
        cost_estimate=cost,
    )(hidden, lstm_outputs, w_attn_tp, b_attn_p, w_ctx_p)

    return ws, aw


attention_forward_jit = jax.jit(attention_forward)


def reference_forward(hidden, lstm_outputs, w_attn, b_attn, w_ctx):
    z = jnp.tanh(jnp.einsum('bsh,oh->bso', lstm_outputs, w_attn) + b_attn)
    scores = jnp.einsum('bsh,h->bs', z, w_ctx.reshape(-1))
    attn_weights = jax.nn.softmax(scores, axis=1)
    weighted_sum = jnp.sum(hidden * attn_weights[:, :, None], axis=1)
    return weighted_sum, attn_weights


if __name__ == "__main__":
    B, S, H = 2, 8, 32

    key = jax.random.PRNGKey(0)
    k1, k2, k3, k4, k5 = jax.random.split(key, 5)

    # Deterministic parameter init (shapes follow nn.Linear layouts).
    w_attn = jax.random.normal(k1, (H, H), jnp.float32) * 0.1   # attn.weight   [out, in]
    b_attn = jax.random.normal(k2, (H,), jnp.float32) * 0.1     # attn.bias
    w_ctx = jax.random.normal(k3, (1, H), jnp.float32) * 0.1    # context_vector.weight

    hidden = jax.random.normal(k4, (B, S, H), jnp.float32)
    lstm_outputs = jax.random.normal(k5, (B, S, H), jnp.float32)

    # One-time parameter preprocessing (hoisted out of the per-call path).
    w_attn_tp, b_attn_p, w_ctx_p = prepare_attention_params(w_attn, b_attn, w_ctx)
    jax.block_until_ready((w_attn_tp, b_attn_p, w_ctx_p))

    ws, aw = attention_forward_jit(hidden, lstm_outputs, w_attn_tp, b_attn_p, w_ctx_p)
    jax.block_until_ready((ws, aw))

    ws_ref, aw_ref = reference_forward(hidden, lstm_outputs, w_attn, b_attn, w_ctx)
    assert ws.shape == (B, H) and aw.shape == (B, S)
    assert jnp.allclose(ws, ws_ref, atol=1e-5, rtol=1e-5)
    assert jnp.allclose(aw, aw_ref, atol=1e-5, rtol=1e-5)

    print("KERNEL_OK")
</pallas_src>

<mosaic_0001>
module attributes {stable_mosaic.version = 11 : i64} {
  func.func @_attention_kernel(%arg0: memref<2x8x32xf32, #tpu.memory_space<vmem>>, %arg1: memref<2x8x32xf32, #tpu.memory_space<vmem>>, %arg2: memref<32x128xf32, #tpu.memory_space<vmem>>, %arg3: memref<1x128xf32, #tpu.memory_space<vmem>>, %arg4: memref<1x128xf32, #tpu.memory_space<vmem>>, %arg5: memref<2x32xf32, #tpu.memory_space<vmem>>, %arg6: memref<2x8xf32, #tpu.memory_space<vmem>>) attributes {dimension_semantics = [], scalar_prefetch = 0 : i64, scratch_operands = 0 : i64, tpu.core_type = #tpu.core_type<tc>} {
    %c0 = arith.constant 0 : index
    %c0_0 = arith.constant 0 : index
    %c0_1 = arith.constant 0 : index
    %0 = vector.load %arg1[%c0, %c0_0, %c0_1] : memref<2x8x32xf32, #tpu.memory_space<vmem>>, vector<2x8x32xf32>
    %1 = vector.shape_cast %0 : vector<2x8x32xf32> to vector<16x32xf32>
    %c0_2 = arith.constant 0 : index
    %c0_3 = arith.constant 0 : index
    %2 = vector.load %arg2[%c0_2, %c0_3] : memref<32x128xf32, #tpu.memory_space<vmem>>, vector<32x128xf32>
    %cst = arith.constant dense<0.000000e+00> : vector<16x128xf32>
    %3 = tpu.matmul %1, %2, %cst {dimension_numbers = #tpu.dot_dimension_numbers<[1], [0], [0], [1], [0, 0, 1, 1], [], []>} : vector<16x32xf32>, vector<32x128xf32>, vector<16x128xf32> -> vector<16x128xf32>
    %c0_4 = arith.constant 0 : index
    %c0_5 = arith.constant 0 : index
    %4 = vector.load %arg3[%c0_4, %c0_5] : memref<1x128xf32, #tpu.memory_space<vmem>>, vector<1x128xf32>
    %5 = vector.broadcast %4 : vector<1x128xf32> to vector<16x128xf32>
    %6 = arith.addf %3, %5 : vector<16x128xf32>
    %7 = math.tanh %6 : vector<16x128xf32>
    %8 = vector.shape_cast %7 : vector<16x128xf32> to vector<2x8x128xf32>
    %c0_6 = arith.constant 0 : index
    %c0_7 = arith.constant 0 : index
    %9 = vector.load %arg4[%c0_6, %c0_7] : memref<1x128xf32, #tpu.memory_space<vmem>>, vector<1x128xf32>
    %10 = vector.shape_cast %9 : vector<1x128xf32> to vector<1x1x128xf32>
    %11 = vector.broadcast %10 : vector<1x1x128xf32> to vector<2x8x128xf32>
    %12 = arith.mulf %8, %11 : vector<2x8x128xf32>
    %cst_8 = arith.constant dense<0.000000e+00> : vector<2x8xf32>
    %13 = vector.multi_reduction <add>, %12, %cst_8 [2] : vector<2x8x128xf32> to vector<2x8xf32>
    %cst_9 = arith.constant dense<0xFF800000> : vector<2xf32>
    %14 = vector.multi_reduction <maximumf>, %13, %cst_9 [1] : vector<2x8xf32> to vector<2xf32>
    %15 = vector.shape_cast %14 : vector<2xf32> to vector<2x1xf32>
    %16 = vector.broadcast %15 : vector<2x1xf32> to vector<2x8xf32>
    %17 = arith.subf %13, %16 : vector<2x8xf32>
    %18 = math.exp %17 : vector<2x8xf32>
    %cst_10 = arith.constant dense<0.000000e+00> : vector<2xf32>
    %19 = vector.multi_reduction <add>, %18, %cst_10 [1] : vector<2x8xf32> to vector<2xf32>
    %20 = vector.shape_cast %19 : vector<2xf32> to vector<2x1xf32>
    %21 = tpu.reciprocal %20 : vector<2x1xf32> -> vector<2x1xf32>
    %22 = vector.broadcast %21 : vector<2x1xf32> to vector<2x8xf32>
    %23 = arith.mulf %18, %22 : vector<2x8xf32>
    %c0_11 = arith.constant 0 : index
    %c0_12 = arith.constant 0 : index
    %c0_13 = arith.constant 0 : index
    %24 = vector.load %arg0[%c0_11, %c0_12, %c0_13] : memref<2x8x32xf32, #tpu.memory_space<vmem>>, vector<2x8x32xf32>
    %25 = vector.shape_cast %23 : vector<2x8xf32> to vector<2x8x1xf32>
    %26 = vector.broadcast %25 : vector<2x8x1xf32> to vector<2x8x32xf32>
    %27 = arith.mulf %24, %26 : vector<2x8x32xf32>
    %cst_14 = arith.constant dense<0.000000e+00> : vector<2x32xf32>
    %28 = vector.multi_reduction <add>, %27, %cst_14 [1] : vector<2x8x32xf32> to vector<2x32xf32>
    %c0_15 = arith.constant 0 : index
    %c0_16 = arith.constant 0 : index
    %29 = vector.load %arg5[%c0_15, %c0_16] : memref<2x32xf32, #tpu.memory_space<vmem>>, vector<2x32xf32>
    tpu.vector_store %arg5[%c0_15, %c0_16], %28 {strides = array<i32>} : memref<2x32xf32, #tpu.memory_space<vmem>>, vector<2x32xf32>,
    %c0_17 = arith.constant 0 : index
    %c0_18 = arith.constant 0 : index
    %30 = vector.load %arg6[%c0_17, %c0_18] : memref<2x8xf32, #tpu.memory_space<vmem>>, vector<2x8xf32>
    tpu.vector_store %arg6[%c0_17, %c0_18], %23 {strides = array<i32>} : memref<2x8xf32, #tpu.memory_space<vmem>>, vector<2x8xf32>,
    return
  }
}

</mosaic_0001>

<bundles_post_ra>
// kernel: attention_forward.1
= control target key start
LH: loop header
LB: loop body
LE: loop exit
PB: predicated region body
PF: predicated region fallthrough
CT: control target
= control target key end

     0   :  { %12 = vsyncpa [#allocation3], 0  ;;  %s496_s0 = inlined_call_operand.hbm [shape: f32[2,8,32], index: 0, kind: input, shape index: {}]   ;;  %s497_s1 = inlined_call_operand.hbm [shape: f32[2,8,32], index: 1, kind: input, shape index: {}]   ;;  %s498_s2 = inlined_call_operand.hbm [shape: f32[32,128], index: 2, kind: input, shape index: {}]   ;;  %s499_s3 = inlined_call_operand.vmem [shape: f32[1,128], index: 3, kind: input, shape index: {}]   ;;  %s500_s4 = inlined_call_operand.vmem [shape: f32[1,128], index: 4, kind: input, shape index: {}]   ;;  %s501_s5 = inlined_call_operand.hbm [shape: f32[2,32], index: 5, kind: output, shape index: {0}]   ;;  %s502_s6 = inlined_call_operand.hbm [shape: f32[2,8], index: 6, kind: output, shape index: {1}]  }
   0x1   :  { %13 = vsyncpa [#allocation6], 0 }
   0x2   :  { %14 = vsyncpa [#allocation4], 0 }
   0x3   :  { %15 = vsyncpa [#allocation10], 0  ;;  %s33_s23 = sshll.u32 %s497_s1, 4  ;;  %s413_s24 = smov [#allocation5]   ;;  %s34_s23 = int_to_ptr.hbm [resolvable:$true] %s33_s23 }
   0x4   :  { %s35_s25 = sshll.u32 %s413_s24, 4  ;;  %s20_s28 = sshll.u32 %s496_s0, 4  ;;  %s36_s25 = int_to_ptr.vmem [resolvable:$true] %s35_s25  ;;  %s21_s28 = int_to_ptr.hbm [resolvable:$true] %s20_s28 }
   0x5   :  { %s414_s29 = smov 128   ;;  %s415_s30 = smov 8  }
   0x6   :  { %41 = dma.hbm_to_vmem [thread:$0]  %s34_s23, 256, %s36_s25, [#allocation6], %s414_s29, %s414_s29, %s415_s30  }
   0x7   :  { %s416_s7 = smov [#allocation2]   ;;  %s46_s11 = sshll.u32 %s498_s2, 4  ;;  %s47_s11 = int_to_ptr.hbm [resolvable:$true] %s46_s11 }
   0x8   :  { %s22_s8 = sshll.u32 %s416_s7, 4  ;;  %s417_s1 = smov [#allocation7]   ;;  %s23_s8 = int_to_ptr.vmem [resolvable:$true] %s22_s8 }
   0x9   :  { %28 = dma.hbm_to_vmem [thread:$0]  %s21_s28, 256, %s23_s8, [#allocation3], %s414_s29, %s414_s29, %s415_s30  }
   0xa   :  { %s48_s12 = sshll.u32 %s417_s1, 4  ;;  %s49_s12 = int_to_ptr.vmem [resolvable:$true] %s48_s12 }
   0xb   :  { %54 = dma.hbm_to_vmem [thread:$0]  %s47_s11, 512, %s49_s12, [#allocation6], %s414_s29, %s414_s29, %s415_s30  }
   0xc   :  { %405 = dma.done.wait [#allocation3], 256  }
   0xd   :  { %406 = vsyncadd [#allocation3], 4294967040 }
   0xe   :  { %407 = dma.done.wait [#allocation6], 768  }
   0xf   :  { %408 = vsyncadd [#allocation6], 4294966528  ;;  %v76_v0 = vld [vmem:[#allocation7 + $0x18] sm:$0xff]  ;;  %v75_v1 = vld [vmem:[#allocation7 + $0x10] sm:$0xff]  ;;  %vm81_vm0 = vcmask 261120   ;;  %v125_v17 = vlaneseq  ;;  %vm129_vm1 = vcmask 1041409  }
  0x10   :  { %100 = vmatpush.msra.mxu0 %v76_v0  ;;  %258 = vmatpush.msra.mxu1 %v76_v0  ;;  %v74_v2 = vld [vmem:[#allocation7 + $0x8] sm:$0xff]  ;;  %v73_v3 = vld [vmem:[#allocation7] sm:$0xff]  ;;  %v71_v4 = vld [vmem:[#allocation5] sm:$0xff]  ;;  %vm132_vm2 = vcmask 58368   ;;  %v418_v24 = vmov 0   ;;  %s240_s17 = sshll.u32 %s502_s6, 4  ;;  %s241_s17 = int_to_ptr.hbm [resolvable:$true] %s240_s17 }
  0x11   :  { %v72_v5 = vld [vmem:[#allocation5 + $0x8] sm:$0xff]  ;;  %v273_v6 = vld [vmem:[%s499_s3] ss:$0 sm:$0xff]  ;;  %v473_v18 = vand.u32 127, %v125_v17  ;;  %271 = vset.pattern.permute.xlu2 %v418_v24  ;;  %270 = vset.pattern.permute.xlu1 %v418_v24  ;;  %v184_v55 = vld [vmem:[#allocation2 + $0x8] sm:$0xff]  ;;  %s419_s3 = smov [#allocation9]  }
  0x12   :  { %101 = vmatpush.msra.mxu0 %v75_v1  ;;  %259 = vmatpush.msra.mxu1 %v75_v1  ;;  %v274_v11 = vld [vmem:[%s500_s4] ss:$0 sm:$0xff]  ;;  %s238_s4 = sshll.u32 %s419_s3, 4  ;;  %s420_s6 = smov [#allocation8]   ;;  %vm215_vm7 = vcmask 254976   ;;  %s239_s4 = int_to_ptr.vmem [resolvable:$true] %s238_s4 }
  0x13   :  { %272 = vset.pattern.permute.xlu0 %v418_v24  ;;  %v183_v56 = vld [vmem:[#allocation2] sm:$0xff]  ;;  %s227_s18 = sshll.u32 %s420_s6, 4  ;;  %s229_s21 = sshll.u32 %s501_s5, 4  ;;  %s228_s18 = int_to_ptr.vmem [resolvable:$true] %s227_s18  ;;  %s230_s21 = int_to_ptr.hbm [resolvable:$true] %s229_s21 }
  0x14   :  { %102 = vmatpush.msra.mxu0 %v74_v2  ;;  %260 = vmatpush.msra.mxu1 %v74_v2 }
  0x16   :  { %103 = vmatpush.msra.mxu0 %v73_v3  ;;  %261 = vmatpush.msra.mxu1 %v73_v3 }
  0x17   :  { %256 = vmatmul.msk.f32.vlgmr.msra.gmra.mxu0 %vm81_vm0, %v71_v4  ;;  %257 = vmatmul.msk.f32.vlgmr.msra.gmra.mxu1 %vm81_vm0, %v72_v5 }
  0x94   :  { %v105_v7 = vpop.f32.mrf.mxu0  ;;  %v108_v8 = vpop.f32.mrf.mxu1 }
  0x95   :  { %v106_v9 = vadd.f32 %v273_v6, %v105_v7  ;;  %v109_v10 = vadd.f32 %v273_v6, %v108_v8 }
  0x97   :  { %275 = vtanh.f32 %v106_v9 }
  0x98   :  { %277 = vtanh.f32 %v109_v10 }
  0x9d   :  { %v276_v12 = vpop.eup %275 }
  0x9e   :  { %v117_v13 = vmul.f32 %v276_v12, %v274_v11  ;;  %v278_v14 = vpop.eup %277 }
  0x9f   :  { %v118_v15 = vmul.f32 %v278_v14, %v274_v11 }
  0xa0   :  { %119 = vadd.xlane.f32.xlu0 %v117_v13 }
  0xa8   :  { %121 = vadd.xlane.f32.xlu0 %v118_v15 }
 0x113   :  { %v120_v16 = vpop.xlane.xlu0 %119 }
 0x114   :  { %v127_v20 = vperm.slane %v120_v16, %v473_v18 }
 0x11b   :  { %v122_v19 = vpop.xlane.xlu0 %121 }
 0x11c   :  { %v128_v21 = vperm.slane %v122_v19, %v473_v18 }
 0x11e   :  { %v130_v22 = vsel %vm129_vm1, %v128_v21, %v127_v20 }
 0x11f   :  { %v133_v23 = vsel %vm132_vm2, %v130_v22, -inf }
 0x120   :  { %134 = vmax.xlane.f32.xlu1 %v133_v23 }
 0x193   :  { %v135_v25 = vpop.xlane.xlu1 %134 }
 0x194   :  { %v137_v26 = vperm.slane %v135_v25, 0  ;;  %v138_v27 = vperm.slane %v135_v25, 1 }
 0x196   :  { %v141_v28 = vsub.f32 %v120_v16, %v137_v26  ;;  %v142_v29 = vsub.f32 %v122_v19, %v138_v27 }
 0x198   :  { %v143_v30 = vmul.f32 1.442695, %v141_v28  ;;  %v145_v31 = vmul.f32 1.442695, %v142_v29 }
 0x19a   :  { %279 = vpow2.f32 %v143_v30 }
 0x19b   :  { %281 = vpow2.f32 %v145_v31 }
 0x1a0   :  { %v280_v32 = vpop.eup %279 }
 0x1a1   :  { %v282_v33 = vpop.eup %281  ;;  %150 = vperm.xlu1 %270, %v280_v32  }
 0x1a2   :  { %153 = vperm.xlu2 %271, %v282_v33  }
 0x1fc   :  { %v154_v34 = vpop.permute.xlu2 %153 }
 0x1fd   :  { %v156_v36 = vperm.slane %v154_v34, %v473_v18 }
 0x213   :  { %v151_v35 = vpop.permute.xlu1 %150 }
 0x214   :  { %v155_v37 = vperm.slane %v151_v35, %v473_v18 }
 0x216   :  { %v157_v38 = vsel %vm129_vm1, %v156_v36, %v155_v37 }
 0x217   :  { %v159_v39 = vsel %vm132_vm2, %v157_v38, 0.0 }
 0x218   :  { %160 = vadd.xlane.f32.xlu2 %v159_v39 }
 0x28b   :  { %v161_v40 = vpop.xlane.xlu2 %160 }
 0x28c   :  { %283 = vrcp.f32 %v161_v40  ;;  %v173_v44 = vand.u32 2147483648, %v161_v40  ;;  %v171_v46 = vand.u32 2147483647, %v161_v40  ;;  %vm167_vm4 = vweird.f32 %v161_v40 }
 0x28e   :  { %v174_v48 = vor.u32 1.1754944e-38, %v173_v44  ;;  %vm172_vm6 = vcmp.eq.f32.partialorder %v171_v46, 8.507059e+37 }
 0x292   :  { %v284_v41 = vpop.eup %283 }
 0x293   :  { %v163_v42 = vmul.f32 %v284_v41, %v161_v40  ;;  %vm168_vm3 = vweird.f32 %v284_v41 }
 0x294   :  { %vm169_vm5 = vmor %vm167_vm4, %vm168_vm3 }
 0x295   :  { %v164_v43 = vsub.f32 1.0, %v163_v42 }
 0x297   :  { %v165_v45 = vmul.f32 %v284_v41, %v164_v43 }
 0x299   :  { %v166_v47 = vadd.f32 %v284_v41, %v165_v45 }
 0x29b   :  { %v170_v49 = vsel %vm169_vm5, %v284_v41, %v166_v47 }
 0x29c   :  { %v175_v50 = vsel %vm172_vm6, %v174_v48, %v170_v49 }
 0x29d   :  { %v178_v51 = vperm.slane %v175_v50, 1  ;;  %v177_v52 = vperm.slane %v175_v50, 0 }
 0x29f   :  { %v182_v53 = vmul.f32 %v282_v33, %v178_v51  ;;  %v181_v54 = vmul.f32 %v280_v32, %v177_v52 }
 0x2a1   :  { %192 = vperm.xlu1 %270, %v182_v53   ;;  %187 = vperm.xlu0 %272, %v181_v54  }
 0x313   :  { %v193_v57 = vpop.permute.xlu1 %192  ;;  %v188_v58 = vpop.permute.xlu0 %187 }
 0x314   :  { %v196_v59 = vmul.f32 %v193_v57, %v184_v55  ;;  %v218_v60 = vperm.slane %v193_v57, %v473_v18  ;;  %v195_v61 = vmul.f32 %v188_v58, %v183_v56  ;;  %v217_v62 = vperm.slane %v188_v58, %v473_v18 }
 0x316   :  { %v204_v63 = vsel %vm81_vm0, %v196_v59, 0.0  ;;  %v197_v0 = vsel %vm81_vm0, %v195_v61, 0.0  ;;  %v219_v1 = vsel %vm129_vm1, %v218_v60, %v217_v62 }
 0x317   :  { %v205_v2 = vrot.slane %v204_v63, 4  ;;  %v198_v3 = vrot.slane %v197_v0, 4  ;;  %221 = vst.msk [vmem:[#allocation9] sm:$0x3] %vm132_vm2, %v219_v1 }
 0x318   :  { %243 = dma.vmem_to_hbm [thread:$0]  %s239_s4, 32, %s241_s17, [#allocation10]  }
 0x319   :  { %v206_v4 = vadd.f32 %v205_v2, %v204_v63  ;;  %v199_v5 = vadd.f32 %v198_v3, %v197_v0 }
 0x31b   :  { %v207_v6 = vrot.slane %v206_v4, 2  ;;  %v200_v7 = vrot.slane %v199_v5, 2 }
 0x31d   :  { %v208_v8 = vadd.f32 %v207_v6, %v206_v4  ;;  %v201_v9 = vadd.f32 %v200_v7, %v199_v5 }
 0x31f   :  { %v209_v10 = vrot.slane %v208_v8, 1  ;;  %v202_v11 = vrot.slane %v201_v9, 1 }
 0x321   :  { %v210_v12 = vadd.f32 %v209_v10, %v208_v8  ;;  %v203_v13 = vadd.f32 %v202_v11, %v201_v9 }
 0x323   :  { %v213_v14 = vsel %vm129_vm1, %v210_v12, %v203_v13 }
 0x324   :  { %216 = vst.msk [vmem:[#allocation8] sm:$0x3] %vm215_vm7, %v213_v14 }
 0x325   :  { %232 = dma.vmem_to_hbm [thread:$0]  %s228_s18, 32, %s230_s21, [#allocation4]  }
 0x326   :  { %409 = dma.done.wait [#allocation4], 32  }
 0x327   :  { %410 = vsyncadd [#allocation4], 4294967264 }
 0x328   :  { %411 = dma.done.wait [#allocation10], 32  }
 0x329   :  { %412 = vsyncadd [#allocation10], 4294967264 }
 0x32a   :  { %252 = vsyncpa [#allocation3], 1 }
 0x32b   :  { %253 = vsyncpa [#allocation6], 1 }
 0x32c   :  { %254 = vsyncpa [#allocation4], 1 }
 0x32d   :  { %255 = vsyncpa [#allocation10], 1 }

</bundles_post_ra>
